<compile_context>
chip_gen: v7x
topology: tpu7x:2x2x1
jax: 0.10.0
libtpu: 0.0.40
codegen_flags: <defaults>
</compile_context>

<pallas_src>
import jax
import jax.numpy as jnp
from jax.experimental import pallas as pl
from jax.experimental.pallas import tpu as pltpu

C_IN, C_OUT, KSIZE, STRIDE = 3, 3, 5, 5
K_DIM = C_IN * KSIZE * KSIZE          # 75 contraction rows, unpadded in HBM
LANES = 128
TM_TARGET = 16384                     # lanes per grid step (review: 8K-16K sweep)
VMEM_LIMIT = 32 * 1024 * 1024         # explicit scoped-VMEM cap; safe on v5e/v6e/v7x


def _round_up(x, m):
    return (x + m - 1) // m * m


def _choose_tiling(m):
    """Pick (tm, m_pad) so that:
       * tm is a multiple of 128 (lane-dense, unmasked vst),
       * the grid has an even number of blocks >= 2 (both v7x TCs busy),
       * tm evenly divides m_pad and padding is <= ~n_blocks*128 columns."""
    m128 = _round_up(max(m, 1), LANES)
    n_blocks = max(2, pl.cdiv(m128, TM_TARGET))
    n_blocks = _round_up(n_blocks, 2)                 # even count for megacore
    tm = _round_up(pl.cdiv(m128, n_blocks), LANES)
    m_pad = tm * n_blocks
    return tm, m_pad, n_blocks


def _conv1_kernel(w_ref, b_ref, p_ref, o_ref):
    # w_ref: (3, 75)  resident weights (constant index map)
    # b_ref: (3, 1)   resident bias, broadcast along lanes
    # p_ref: (75, TM) streamed patch columns for this grid step
    # o_ref: (3, TM)  lane-dense output block
    o_ref[...] = (
        jnp.dot(w_ref[...], p_ref[...], preferred_element_type=jnp.float32)
        + b_ref[...]
    )


@jax.jit
def conv1_pallas(x, weight, bias):
    """Conv2d(3, 3, kernel_size=5, stride=5) on NCHW float32 input."""
    n, c, h, w = x.shape
    oh, ow = h // STRIDE, w // STRIDE
    # Match PyTorch's VALID stride-5 conv: silently crop any remainder rows/cols.
    x = x[:, :, : oh * STRIDE, : ow * STRIDE]
    m = n * oh * ow

    # im2col^T: build (75, M) with one XLA transpose pass; columns are flattened
    # output pixels ordered (n, oh, ow), rows ordered (c, kh, kw).
    # (The pad below should fuse with this pass; it adds at most ~n_blocks*128
    # dead columns thanks to _choose_tiling.)
    xr = x.reshape(n, c, oh, KSIZE, ow, KSIZE)
    p_t = xr.transpose(1, 3, 5, 0, 2, 4).reshape(K_DIM, m)

    tm, m_pad, n_blocks = _choose_tiling(m)
    if m_pad != m:
        p_t = jnp.pad(p_t, ((0, 0), (0, m_pad - m)))

    # PyTorch weight (out_c, in_c, kh, kw) -> (3, 75); bias -> (3, 1). Unpadded:
    # block dims equal the full array dims, so no sublane padding is needed and
    # the kernel output stays at 3 rows (2.67x less output HBM traffic).
    w_lhs = weight.reshape(C_OUT, K_DIM)
    b_col = bias.reshape(C_OUT, 1)

    out_t = pl.pallas_call(
        _conv1_kernel,
        out_shape=jax.ShapeDtypeStruct((C_OUT, m_pad), jnp.float32),
        grid_spec=pltpu.PrefetchScalarGridSpec(
            num_scalar_prefetch=0,
            grid=(n_blocks,),
            in_specs=[
                pl.BlockSpec((C_OUT, K_DIM), lambda i: (0, 0)),   # resident
                pl.BlockSpec((C_OUT, 1), lambda i: (0, 0)),       # resident
                pl.BlockSpec((K_DIM, tm), lambda i: (0, i)),      # streamed
            ],
            out_specs=pl.BlockSpec((C_OUT, tm), lambda i: (0, i)),
        ),
        compiler_params=pltpu.CompilerParams(
            dimension_semantics=("parallel",),
            vmem_limit_bytes=VMEM_LIMIT,
        ),
    )(w_lhs, b_col, p_t)

    # Drop padded tail columns (bias-only garbage) and restore NCHW layout.
    out = out_t[:, :m].reshape(C_OUT, n, oh, ow).transpose(1, 0, 2, 3)
    return out


class LipFDPallas:
    """Pallas port of LipFD.

    Only conv1 (the defined compute of `get_features`) is implemented as a
    TPU kernel; the CLIP image encoder and `get_backbone()` come from
    external code not present in the reference module.
    """

    def __init__(self, key):
        kw_, kb_ = jax.random.split(key)
        fan_in = C_IN * KSIZE * KSIZE
        bound = 1.0 / (fan_in ** 0.5)
        self.conv1_w = jax.random.uniform(
            kw_, (C_OUT, C_IN, KSIZE, KSIZE), jnp.float32, -bound, bound)
        self.conv1_b = jax.random.uniform(
            kb_, (C_OUT,), jnp.float32, -bound, bound)

    def get_features(self, x):
        x = conv1_pallas(x, self.conv1_w, self.conv1_b)
        # TODO(synk): CLIP `encoder.encode_image(x)` has no in-script
        # definition (external pretrained model) — not reproducible here.
        return x

    def forward(self, x, feature):
        # TODO(synk): `get_backbone()` is undefined in the reference module;
        # the original forward is `self.backbone(x, feature)`. We return the
        # Pallas-computed conv1 features as the implementable portion.
        del feature
        return self.get_features(x)


def _conv_ref(x, w, b):
    return jax.lax.conv_general_dilated(
        x, w, window_strides=(STRIDE, STRIDE), padding="VALID",
        dimension_numbers=("NCHW", "OIHW", "NCHW"),
    ) + b.reshape(1, -1, 1, 1)


if __name__ == "__main__":
    key = jax.random.PRNGKey(0)
    k_in, k_in2, k_feat, k_par = jax.random.split(key, 4)

    model = LipFDPallas(k_par)

    # Small shapes consistent with conv1: N=2, C=3, H=W=20 -> output (2,3,4,4).
    x = jax.random.normal(k_in, (2, 3, 20, 20), jnp.float32)
    feature = jax.random.normal(k_feat, (2, 32), jnp.float32)
    out = jax.block_until_ready(model.forward(x, feature))
    ref = _conv_ref(x, model.conv1_w, model.conv1_b)
    assert out.shape == (2, 3, 4, 4), out.shape
    assert jnp.allclose(out, ref, atol=2e-4, rtol=2e-4), "mismatch (small)"

    # Moderate case exercising the even-block tiling and ragged-M padding:
    # M = 2*40*40 = 3200 -> n_blocks = 2, tm = 1664, m_pad = 3328 (~3.8% pad).
    x2 = jax.random.normal(k_in2, (2, 3, 200, 200), jnp.float32)
    out2 = jax.block_until_ready(model.get_features(x2))
    ref2 = _conv_ref(x2, model.conv1_w, model.conv1_b)
    assert out2.shape == (2, 3, 40, 40), out2.shape
    assert jnp.allclose(out2, ref2, atol=2e-4, rtol=2e-4), "mismatch (large)"

    print("KERNEL_OK")
</pallas_src>

<mosaic_0001>
module attributes {stable_mosaic.version = 11 : i64} {
  func.func @_conv1_kernel(%arg0: i32, %arg1: memref<3x75xf32, #tpu.memory_space<vmem>>, %arg2: memref<3x1xf32, #tpu.memory_space<vmem>>, %arg3: memref<75x128xf32, #tpu.memory_space<vmem>>, %arg4: memref<3x128xf32, #tpu.memory_space<vmem>>) attributes {dimension_semantics = [#tpu.dimension_semantics<parallel>], iteration_bounds = array<i64: 2>, scalar_prefetch = 0 : i64, scratch_operands = 0 : i64, tpu.core_type = #tpu.core_type<tc>, window_params = [{pipeline_mode = #tpu.pipeline_mode<synchronous>, transform_indices = @transform_0, window_bounds = array<i64: 3, 75>}, {pipeline_mode = #tpu.pipeline_mode<synchronous>, transform_indices = @transform_1, window_bounds = array<i64: 3, 1>}, {transform_indices = @transform_2, window_bounds = array<i64: 75, 128>}, {transform_indices = @transform_3, window_bounds = array<i64: 3, 128>}]} {
    %c0 = arith.constant 0 : index
    %c0_0 = arith.constant 0 : index
    %0 = vector.load %arg1[%c0, %c0_0] : memref<3x75xf32, #tpu.memory_space<vmem>>, vector<3x75xf32>
    %c0_1 = arith.constant 0 : index
    %c0_2 = arith.constant 0 : index
    %1 = vector.load %arg3[%c0_1, %c0_2] : memref<75x128xf32, #tpu.memory_space<vmem>>, vector<75x128xf32>
    %cst = arith.constant dense<0.000000e+00> : vector<3x128xf32>
    %2 = tpu.matmul %0, %1, %cst {dimension_numbers = #tpu.dot_dimension_numbers<[1], [0], [0], [1], [0, 0, 1, 1], [], []>} : vector<3x75xf32>, vector<75x128xf32>, vector<3x128xf32> -> vector<3x128xf32>
    %c0_3 = arith.constant 0 : index
    %c0_4 = arith.constant 0 : index
    %3 = vector.load %arg2[%c0_3, %c0_4] : memref<3x1xf32, #tpu.memory_space<vmem>>, vector<3x1xf32>
    %4 = vector.broadcast %3 : vector<3x1xf32> to vector<3x128xf32>
    %5 = arith.addf %2, %4 : vector<3x128xf32>
    %c0_5 = arith.constant 0 : index
    %c0_6 = arith.constant 0 : index
    %6 = vector.load %arg4[%c0_5, %c0_6] : memref<3x128xf32, #tpu.memory_space<vmem>>, vector<3x128xf32>
    tpu.vector_store %arg4[%c0_5, %c0_6], %5 {strides = array<i32>} : memref<3x128xf32, #tpu.memory_space<vmem>>, vector<3x128xf32>,
    return
  }
  func.func @transform_0(%arg0: i32) -> (i32, i32) {
    %c0_i32 = arith.constant 0 : i32
    %c0_i32_0 = arith.constant 0 : i32
    %c0_i32_1 = arith.constant 0 : i32
    return %c0_i32, %c0_i32_0 : i32, i32
  }
  func.func @transform_1(%arg0: i32) -> (i32, i32) {
    %c0_i32 = arith.constant 0 : i32
    %c0_i32_0 = arith.constant 0 : i32
    %c0_i32_1 = arith.constant 0 : i32
    return %c0_i32, %c0_i32_0 : i32, i32
  }
  func.func @transform_2(%arg0: i32) -> (i32, i32) {
    %c0_i32 = arith.constant 0 : i32
    %c0_i32_0 = arith.constant 0 : i32
    return %c0_i32, %arg0 : i32, i32
  }
  func.func @transform_3(%arg0: i32) -> (i32, i32) {
    %c0_i32 = arith.constant 0 : i32
    %c0_i32_0 = arith.constant 0 : i32
    return %c0_i32, %arg0 : i32, i32
  }
}

</mosaic_0001>

<bundles_post_ra>
// kernel: conv1_pallas.1
= control target key start
LH: loop header
LB: loop body
LE: loop exit
PB: predicated region body
PF: predicated region fallthrough
CT: control target
= control target key end

     0   :  { %s536_s12 = smov 0   ;;  %s538_s13 = smov 0   ;;  %s596_s0 = inlined_call_operand.vmem [shape: f32[3,75], index: 0, kind: input, shape index: {}]   ;;  %s597_s1 = inlined_call_operand.vmem [shape: f32[3,1], index: 1, kind: input, shape index: {}]   ;;  %s598_s2 = inlined_call_operand.vmem [shape: f32[75,256], index: 2, kind: input, shape index: {}]   ;;  %s599_s3 = inlined_call_operand.vmem [shape: f32[3,256], index: 3, kind: output, shape index: {}]  }
   0x1   :  { %s540_s14 = smov 0  }
   0x2 LB: > { %s394_s15 = sadd.s32 4294967295, %s509_s14   ;;  %s553_s16 = sadd.s32 1, %s509_s14   ;;  %s509_s14 = sphi %s540_s14, %s602_s14   ;;  %s505_s13 = sphi %s538_s13, %s601_s13   ;;  %s501_s12 = sphi %s536_s12, %s600_s12  }
   0x3   : > { %s59_s17 = ssub.s32 %s509_s14, %s553_s16  ;;  %s62_s18 = sadd.s32 1, %s505_s13 }
   0x4   : > { %p60_p0 = scmp.eq.s32.totalorder %s59_s17, 0  ;;  %p69_p1 = scmp.ne.s32.totalorder %s505_s13, %s501_s12 }
   0x5   : > { %p70_p2 = scmp.eq.s32.totalorder %s509_s14, 0  ;;  %p397_p4 = scmp.ge.s32.totalorder %s509_s14, 2 }
   0x6   : > { %s562_s19 = scalar_select %p60_p0, %s505_s13, %s62_s18  }
   0x7   : > { %p71_p3 = por %p70_p2, %p69_p1  ;;  %127 = sbr.rel (%p397_p4) target bundleno = 23 (0x17), region = 24 }
   0xe   : > { %130 = sbr.rel (!%p71_p3) target bundleno = 23 (0x17), region = 28  ;;  %s132_s20 = sand.u32 (%p71_p3), 1, %s505_s13  }
   0xf   : > { %s398_s21 = sshll.u32 (%p71_p3), %s509_s14, 3  ;;  %s455_s22 = smul.u32 (%p71_p3), 80, %s132_s20 }
  0x10   : > { %s136_s25 = scalar_lea.vmem (%p71_p3), %s598_s2, %s398_s21 }
  0x11   : > { %v182_v0 = vld [vmem:[%s136_s25] sm:$0xff] (%p71_p3)  ;;  %v184_v1 = vld [vmem:[%s136_s25 + $0x10] sm:$0xff] (%p71_p3)  ;;  %s134_s26 = scalar_lea.vmem (%p71_p3), [#allocation2], %s455_s22 }
  0x12   : > { %v186_v2 = vld [vmem:[%s136_s25 + $0x20] sm:$0xff] (%p71_p3)  ;;  %v188_v3 = vld [vmem:[%s136_s25 + $0x30] sm:$0xff] (%p71_p3)  ;;  %183 = vst [vmem:[%s134_s26] sm:$0xff] (%p71_p3), %v182_v0  ;;  %185 = vst [vmem:[%s134_s26 + $0x8] sm:$0xff] (%p71_p3), %v184_v1 }
  0x13   : > { %v190_v4 = vld [vmem:[%s136_s25 + $0x40] sm:$0xff] (%p71_p3)  ;;  %v192_v5 = vld [vmem:[%s136_s25 + $0x50] sm:$0xff] (%p71_p3)  ;;  %187 = vst [vmem:[%s134_s26 + $0x10] sm:$0xff] (%p71_p3), %v186_v2  ;;  %189 = vst [vmem:[%s134_s26 + $0x18] sm:$0xff] (%p71_p3), %v188_v3 }
  0x14   : > { %191 = vst [vmem:[%s134_s26 + $0x20] sm:$0xff] (%p71_p3), %v190_v4  ;;  %193 = vst [vmem:[%s134_s26 + $0x28] sm:$0xff] (%p71_p3), %v192_v5  ;;  %v194_v6 = vld [vmem:[%s136_s25 + $0x60] sm:$0xff] (%p71_p3)  ;;  %v196_v7 = vld [vmem:[%s136_s25 + $0x70] sm:$0xff] (%p71_p3) }
  0x15   : > { %v198_v8 = vld [vmem:[%s136_s25 + $0x80] sm:$0xff]  ;;  %195 = vst [vmem:[%s134_s26 + $0x30] sm:$0xff] %v194_v6  ;;  %197 = vst [vmem:[%s134_s26 + $0x38] sm:$0xff] %v196_v7  ;;  %v200_v9 = vld [vmem:[%s136_s25 + $0x90] sm:$0xff] }
  0x16   : > { %199 = vst [vmem:[%s134_s26 + $0x40] sm:$0xff] %v198_v8  ;;  %201 = vst [vmem:[%s134_s26 + $0x48] sm:$0xff] %v200_v9 }
  0x17 PF: > { %p399_p5 = scmp.ge.s32.totalorder %s509_s14, 1  ;;  %p206_p6 = scmp.lt.s32.totalorder %s509_s14, 3 }
  0x19   : > { %p207_p7 = pnand %p399_p5, %p206_p6 }
  0x1a   : > { %s213_s27 = sand.u32 (!%p207_p7), 1, %s501_s12   ;;  %v511_v10 = vmov (!%p207_p7), 0.0|0.0   ;;  %vm512_vm0 = vmmov (!%p207_p7), 0   ;;  %v513_v11 = vmov (!%p207_p7), 0.0   ;;  %v514_v12 = vmov (!%p207_p7), 0   ;;  %p235_p8 = scmp.lt.s32.totalorder (!%p207_p7), %s394_s15, 1 }
  0x1b   : > { %210 = sbr.rel (%p207_p7) target bundleno = 268 (0x10c), region = 66  ;;  %439 = vmatprep.subr.bf16.mxu0 (!%p207_p7), %v511_v10  ;;  %436 = vmatprep.mubr.msk.f32.mxu0 (!%p207_p7), %vm512_vm0, %v513_v11  ;;  %v250_v13 = vld [vmem:[%s597_s1] sm:$0x7] (!%p207_p7)  ;;  %vm260_vm1 = vcmask (!%p207_p7), 1042432   ;;  %vm515_vm2 = vmmov (!%p207_p7), 1   ;;  %vm256_vm4 = vcmask (!%p207_p7), 613376  }
  0x1c   : > { %s456_s28 = smul.u32 (!%p207_p7), 80, %s213_s27  ;;  %486 = vset.pattern.permute.xlu0 (!%p207_p7), %v514_v12  ;;  %vm453_vm3 = vmpackc.low (!%p207_p7), %vm260_vm1, %vm515_vm2  ;;  %v239_v29 = vld [vmem:[%s596_s0] sm:$0x7] (!%p207_p7) }
  0x1d   : > { %253 = vperm.xlu0 (!%p207_p7), %486, %v250_v13  }
  0x1e   : > { %s215_s4 = scalar_lea.vmem (!%p207_p7), [#allocation2], %s456_s28 }
  0x1f   : > { %v240_v14 = vld [vmem:[%s215_s4] sm:$0xff] (!%p207_p7)  ;;  %v241_v15 = vld [vmem:[%s215_s4 + $0x8] sm:$0xff] (!%p207_p7)  ;;  %v242_v16 = vld [vmem:[%s215_s4 + $0x10] sm:$0xff] (!%p207_p7) }
  0x20   : > { %v440_v17 = vpack.c.bf16 (!%p207_p7), %v241_v15, %v240_v14  ;;  %v243_v18 = vld [vmem:[%s215_s4 + $0x18] sm:$0xff] (!%p207_p7)  ;;  %v244_v20 = vld [vmem:[%s215_s4 + $0x20] sm:$0xff] (!%p207_p7)  ;;  %v245_v21 = vld [vmem:[%s215_s4 + $0x28] sm:$0xff] (!%p207_p7) }
  0x21   : > { %v443_v19 = vpack.c.bf16 (!%p207_p7), %v243_v18, %v242_v16  ;;  %v446_v22 = vpack.c.bf16 (!%p207_p7), %v245_v21, %v244_v20  ;;  %v246_v23 = vld [vmem:[%s215_s4 + $0x30] sm:$0xff] (!%p207_p7)  ;;  %v247_v24 = vld [vmem:[%s215_s4 + $0x38] sm:$0xff] (!%p207_p7)  ;;  %v248_v26 = vld [vmem:[%s215_s4 + $0x40] sm:$0xff] (!%p207_p7) }
  0x22   : > { %441 = vmatpush3.bf16.msra.mxu0 %v440_v17  ;;  %v449_v25 = vpack.c.bf16 %v247_v24, %v246_v23  ;;  %v249_v27 = vld [vmem:[%s215_s4 + $0x48] sm:$0x7]  ;;  %s604_s15 = smov (!%p235_p8, %s394_s15), 1 }
  0x23   : > { %442 = vmatprep.subr.bf16.mxu0 %v511_v10  ;;  %v452_v28 = vpack.c.bf16 %v249_v27, %v248_v26  ;;  %s400_s7 = sshll.u32 %s604_s15, 2 }
  0x24   : > { %s238_s10 = scalar_lea.vmem %s599_s3, %s400_s7 }
  0x26   : > { %444 = vmatpush3.bf16.msra.mxu0 %v443_v19 }
  0x27   : > { %445 = vmatprep.subr.bf16.mxu0 %v511_v10 }
  0x2a   : > { %447 = vmatpush3.bf16.msra.mxu0 %v446_v22 }
  0x2b   : > { %448 = vmatprep.subr.bf16.mxu0 %v511_v10 }
  0x2e   : > { %450 = vmatpush3.bf16.msra.mxu0 %v449_v25 }
  0x2f   : > { %451 = vmatprep.subr.bf16.mxu0 %v511_v10 }
  0x32   : > { %454 = vmatpush3.bf16.msk.msra.mxu0 %vm453_vm3, %v452_v28 }
  0x35   : > { %437 = vmatmul.mubr.msk.f32.vlgmr.msra.gmra.mrb[0].mxu0 %vm256_vm4, %v239_v29 }
  0x9c   : > { %v254_v30 = vpop.permute.xlu0 %253 }
 0x108   : > { %v330_v31 = vpop.f32.mrb[0].mxu0 }
 0x109   : > { %v331_v32 = vadd.f32 %v330_v31, %v254_v30  ;;  %v438_v33 = vpop.f32.mrb[1].mxu0 }
 0x10b   : > { %334 = vst [vmem:[%s238_s10] sm:$0x7] %v331_v32 }
 0x10c PF: > { %p10_p9 = scmp.ge.s32.totalorder %s553_s16, 4   ;;  %s600_s12 = smov %s505_s13 }
 0x10d   : > { %s601_s13 = smov %s562_s19  ;;  %s602_s14 = smov %s553_s16 }
 0x10e   :  { %12 = sbr.rel (!%p10_p9) target bundleno = 2 (0x2), region = 105 }

</bundles_post_ra>
